<compile_context>
chip_gen: v5e
topology: v5e:2x2
jax: 0.10.0
libtpu: 0.0.40
codegen_flags: <defaults>
</compile_context>

<pallas_src>
import jax
import jax.numpy as jnp
from jax import lax
from jax.experimental import pallas as pl
from jax.experimental.pallas import tpu as pltpu


def _mlp_kernel(x_ref, w1_ref, w2_ref, o_ref):
    # x: (TB, IN) [bf16 or f32], w1: (IN, HID) [bf16 or f32], w2: (1, HID) f32
    # o: (1, TB) f32, lane-dense (batch along lanes)
    h = jnp.dot(x_ref[...], w1_ref[...],
                preferred_element_type=jnp.float32)          # MXU, f32 acc
    h = jnp.maximum(h, 0.0)                                  # ReLU on VPU (f32)
    # Layer 2: contract HID of (1, HID) with HID of (TB, HID) -> (1, TB),
    # result is already lane-dense (no relayout, no masked partial stores).
    o = lax.dot_general(w2_ref[...], h,
                        dimension_numbers=(((1,), (1,)), ((), ())),
                        preferred_element_type=jnp.float32)
    o_ref[...] = o.astype(o_ref.dtype)


def simple_model_forward(x, w1, w2, *, max_block_b=8192, cast_to_bf16=True):
    """SimpleModel forward.

    x:  (B, IN) float32
    w1: (HID, IN) float32   (PyTorch (out, in) layout for l1)
    w2: (1, HID)  float32   (PyTorch (out, in) layout for l2)
    returns (B, 1) float32
    """
    B, IN = x.shape
    HID, IN2 = w1.shape
    assert IN2 == IN
    assert w2.shape == (1, HID)

    w1_t = w1.T                                   # (IN, HID), tiny, resident
    if cast_to_bf16:
        x_in = x.astype(jnp.bfloat16)             # halves HBM traffic for x
        w1_in = w1_t.astype(jnp.bfloat16)
    else:
        x_in = x
        w1_in = w1_t
    w2_in = w2.astype(jnp.float32)                # layer-2 stays f32

    # ---- tile selection -------------------------------------------------
    # Small batches: single full-extent tile (no divisibility constraints).
    # Large batches: biggest tile <= max_block_b, multiple of 128 (lane-dense
    # output blocks), and at least 2 tiles so v7x uses both TensorCores.
    if B <= 256:
        tb = B
    else:
        half = pl.cdiv(B, 2)
        half = ((half + 127) // 128) * 128        # multiple of 128
        tb = min(max_block_b, half)
    nb = pl.cdiv(B, tb)                           # ragged tail handled by Pallas

    # ---- cost estimate (advisory, helps XLA overlap surrounding ops) ----
    flops = 2 * B * IN * HID + 2 * B * HID
    bytes_accessed = (x_in.size * x_in.dtype.itemsize
                      + w1_in.size * w1_in.dtype.itemsize
                      + w2_in.size * w2_in.dtype.itemsize
                      + B * 4)
    cost = pl.CostEstimate(flops=flops, transcendentals=0,
                           bytes_accessed=bytes_accessed)

    out_row = pl.pallas_call(
        _mlp_kernel,
        out_shape=jax.ShapeDtypeStruct((1, B), jnp.float32),
        grid=(nb,),
        in_specs=[
            pl.BlockSpec((tb, IN), lambda i: (i, 0)),     # x: tiled over batch
            pl.BlockSpec((IN, HID), lambda i: (0, 0)),    # w1_t: resident
            pl.BlockSpec((1, HID), lambda i: (0, 0)),     # w2 row: resident
        ],
        out_specs=pl.BlockSpec((1, tb), lambda i: (0, i)),  # lane-dense output
        compiler_params=pltpu.CompilerParams(
            dimension_semantics=("parallel",),  # independent batch tiles
            vmem_limit_bytes=32 * 1024 * 1024,  # explicit budget, safe on v5e/v6e/v7x
        ),
        cost_estimate=cost,
    )(x_in, w1_in, w2_in)

    return out_row.reshape(B, 1)


if __name__ == "__main__":
    input_size = 32
    hidden = input_size // 2   # 16
    batch = 8

    key = jax.random.PRNGKey(0)
    kx, k1, k2 = jax.random.split(key, 3)

    # Deterministic init mimicking nn.Linear's U(-1/sqrt(fan_in), 1/sqrt(fan_in)),
    # weights in PyTorch (out, in) layout.
    bound1 = 1.0 / jnp.sqrt(input_size)
    bound2 = 1.0 / jnp.sqrt(hidden)
    w1 = jax.random.uniform(k1, (hidden, input_size), jnp.float32, -bound1, bound1)
    w2 = jax.random.uniform(k2, (1, hidden), jnp.float32, -bound2, bound2)
    x = jax.random.normal(kx, (batch, input_size), jnp.float32)

    # Default (bf16-input) path: compare against a reference built from the same
    # bf16-rounded inputs so only accumulation-order differences remain.
    out = jax.block_until_ready(simple_model_forward(x, w1, w2))
    x_b16 = x.astype(jnp.bfloat16).astype(jnp.float32)
    w1_b16 = w1.astype(jnp.bfloat16).astype(jnp.float32)
    ref = jnp.maximum(x_b16 @ w1_b16.T, 0.0) @ w2.T
    assert out.shape == (batch, 1)
    assert jnp.allclose(out, ref, atol=1e-3, rtol=1e-3)

    # f32 path + multi-tile ragged batch (exercises boundary-block handling and
    # the >=2-tile "parallel" grid) with a tight tolerance.
    xb = jax.random.normal(jax.random.PRNGKey(1), (1000, input_size), jnp.float32)
    outb = jax.block_until_ready(
        simple_model_forward(xb, w1, w2, cast_to_bf16=False))
    refb = jnp.maximum(xb @ w1.T, 0.0) @ w2.T
    assert outb.shape == (1000, 1)
    assert jnp.allclose(outb, refb, atol=1e-5, rtol=1e-5)

    print("KERNEL_OK")
</pallas_src>

<mosaic_0001>
module attributes {stable_mosaic.version = 11 : i64} {
  func.func @_mlp_kernel(%arg0: i32, %arg1: memref<8x32xbf16, #tpu.memory_space<vmem>>, %arg2: memref<32x16xbf16, #tpu.memory_space<vmem>>, %arg3: memref<1x16xf32, #tpu.memory_space<vmem>>, %arg4: memref<1x8xf32, #tpu.memory_space<vmem>>) attributes {dimension_semantics = [#tpu.dimension_semantics<parallel>], iteration_bounds = array<i64: 1>, scalar_prefetch = 0 : i64, scratch_operands = 0 : i64, tpu.core_type = #tpu.core_type<tc>, window_params = [{transform_indices = @transform_0, window_bounds = array<i64: 8, 32>}, {pipeline_mode = #tpu.pipeline_mode<synchronous>, transform_indices = @transform_1, window_bounds = array<i64: 32, 16>}, {pipeline_mode = #tpu.pipeline_mode<synchronous>, transform_indices = @transform_2, window_bounds = array<i64: 1, 16>}, {transform_indices = @transform_3, window_bounds = array<i64: 1, 8>}]} {
    %c0 = arith.constant 0 : index
    %c0_0 = arith.constant 0 : index
    %0 = vector.load %arg1[%c0, %c0_0] : memref<8x32xbf16, #tpu.memory_space<vmem>>, vector<8x32xbf16>
    %c0_1 = arith.constant 0 : index
    %c0_2 = arith.constant 0 : index
    %1 = vector.load %arg2[%c0_1, %c0_2] : memref<32x16xbf16, #tpu.memory_space<vmem>>, vector<32x16xbf16>
    %cst = arith.constant dense<0.000000e+00> : vector<8x16xf32>
    %2 = tpu.matmul %0, %1, %cst {dimension_numbers = #tpu.dot_dimension_numbers<[1], [0], [0], [1], [0, 0, 1, 1], [], []>} : vector<8x32xbf16>, vector<32x16xbf16>, vector<8x16xf32> -> vector<8x16xf32>
    %cst_3 = arith.constant 0.000000e+00 : f32
    %3 = vector.broadcast %cst_3 : f32 to vector<8x16xf32>
    %4 = arith.maximumf %2, %3 : vector<8x16xf32>
    %c0_4 = arith.constant 0 : index
    %c0_5 = arith.constant 0 : index
    %5 = vector.load %arg3[%c0_4, %c0_5] : memref<1x16xf32, #tpu.memory_space<vmem>>, vector<1x16xf32>
    %cst_6 = arith.constant dense<0.000000e+00> : vector<1x8xf32>
    %6 = tpu.matmul %5, %4, %cst_6 {dimension_numbers = #tpu.dot_dimension_numbers<[1], [1], [0], [0], [0, 0, 1, 0], [], []>} : vector<1x16xf32>, vector<8x16xf32>, vector<1x8xf32> -> vector<1x8xf32>
    %c0_7 = arith.constant 0 : index
    %c0_8 = arith.constant 0 : index
    %7 = vector.load %arg4[%c0_7, %c0_8] : memref<1x8xf32, #tpu.memory_space<vmem>>, vector<1x8xf32>
    tpu.vector_store %arg4[%c0_7, %c0_8], %6 {strides = array<i32>} : memref<1x8xf32, #tpu.memory_space<vmem>>, vector<1x8xf32>,
    return
  }
  func.func @transform_0(%arg0: i32) -> (i32, i32) {
    %c0_i32 = arith.constant 0 : i32
    %c0_i32_0 = arith.constant 0 : i32
    return %arg0, %c0_i32 : i32, i32
  }
  func.func @transform_1(%arg0: i32) -> (i32, i32) {
    %c0_i32 = arith.constant 0 : i32
    %c0_i32_0 = arith.constant 0 : i32
    %c0_i32_1 = arith.constant 0 : i32
    return %c0_i32, %c0_i32_0 : i32, i32
  }
  func.func @transform_2(%arg0: i32) -> (i32, i32) {
    %c0_i32 = arith.constant 0 : i32
    %c0_i32_0 = arith.constant 0 : i32
    %c0_i32_1 = arith.constant 0 : i32
    return %c0_i32, %c0_i32_0 : i32, i32
  }
  func.func @transform_3(%arg0: i32) -> (i32, i32) {
    %c0_i32 = arith.constant 0 : i32
    %c0_i32_0 = arith.constant 0 : i32
    return %c0_i32, %arg0 : i32, i32
  }
}

</mosaic_0001>

<bundles_post_ra>
// kernel: tpu_custom_call.1
= control target key start
LH: loop header
LB: loop body
LE: loop exit
PB: predicated region body
PF: predicated region fallthrough
CT: control target
= control target key end

     0   :  { %s173_s0 = inlined_call_operand.vmem [shape: bf16[8,32], index: 0, kind: input, shape index: {}]   ;;  %s174_s1 = inlined_call_operand.vmem [shape: bf16[32,16], index: 1, kind: input, shape index: {}]   ;;  %s175_s2 = inlined_call_operand.vmem [shape: f32[1,16], index: 2, kind: input, shape index: {}]   ;;  %s176_s3 = inlined_call_operand.hbm [shape: f32[1,8], index: 3, kind: output, shape index: {}]  }
   0x1   :  { %v109_v0 = vld [vmem:[%s174_s1 + $0x8] sm:$0xff] }
   0x2   :  { %8 = vsyncpa [#allocation3], 0  ;;  %43 = vmatpush.bf16.msra.mxu0 %v109_v0  ;;  %v108_v1 = vld [vmem:[%s174_s1] sm:$0xff]  ;;  %vm33_vm0 = vcmask 261120   ;;  %vm52_vm1 = vcmask 130048   ;;  %s137_s20 = smov [#allocation2]  }
   0x3   :  { %v16_v2 = vld [vmem:[%s173_s0] sm:$0xf]  ;;  %s86_s21 = sshll.u32 %s137_s20, 4  ;;  %s88_s23 = sshll.u32 %s176_s3, 4  ;;  %vm79_vm2 = vcmask 57344   ;;  %s87_s21 = int_to_ptr.vmem [resolvable:$true] %s86_s21  ;;  %s89_s23 = int_to_ptr.hbm [resolvable:$true] %s88_s23 }
   0x4   :  { %v51_v5 = vld [vmem:[%s175_s2] sm:$0x1] }
   0x6   :  { %44 = vmatpush.bf16.msra.mxu0 %v108_v1 }
   0x9   :  { %105 = vmatmul.msk.bf16.vlgmr.msra.gmra.mxu0 %vm33_vm0, %v16_v2 }
  0x86   :  { %v46_v3 = vpop.f32.mrf.mxu0 }
  0x87   :  { %v50_v4 = vmax.f32 %v46_v3, 0.0 }
  0x89   :  { %106 = vmatpush.xpose.msk.msra.mxu1 %vm52_vm1, %v50_v4 }
  0x8c   :  { %107 = vmatmul.msk.f32.vlgmr.msra.gmra.mxu1 %vm52_vm1, %v51_v5 }
  0x8e   :  { %v48_v6 = vpop.f32.mrf.mxu0 }
 0x109   :  { %v76_v7 = vpop.f32.mrf.mxu1 }
 0x10a   :  { %80 = vst.msk [vmem:[#allocation2] sm:$0x1] %vm79_vm2, %v76_v7 }
 0x10b   :  { %91 = dma.vmem_to_hbm [thread:$0]  %s87_s21, 16, %s89_s23, [#allocation3]  }
 0x10c   :  { %135 = dma.done.wait [#allocation3], 16  }
 0x10d   :  { %136 = vsyncadd [#allocation3], 4294967280 }
 0x10e   :  { %96 = vsyncpa [#allocation3], 1 }

</bundles_post_ra>
